<compile_context>
chip_gen: v7x
topology: tpu7x:2x2x1
jax: 0.10.0
libtpu: 0.0.40
codegen_flags: <defaults>
</compile_context>

<pallas_src>
import jax
import jax.numpy as jnp
from jax.experimental import pallas as pl
from jax.experimental.pallas import tpu as pltpu

HIDDEN = 768             # fixed by the module (BERT-base CLS size)
_SINGLE_SHOT_MAX_B = 256  # below this, per-grid-step overhead dominates


def _round_up(x: int, m: int) -> int:
    return ((x + m - 1) // m) * m


def _cls_pooler_kernel(cls_ref, w_ref, b_ref, o_ref):
    # MXU matmul with f32 accumulation (inputs may be f32 or bf16).
    acc = jnp.dot(cls_ref[...], w_ref[...], preferred_element_type=jnp.float32)
    # Bias add (VPU) + sigmoid (EUP) in f32; bias [1, N] broadcasts over rows.
    o_ref[...] = jax.nn.sigmoid(acc + b_ref[...]).astype(o_ref.dtype)


def _cost_estimate(B, K, N, in_itemsize):
    return pl.CostEstimate(
        flops=2 * B * K * N,
        transcendentals=B * N,
        bytes_accessed=(B * K + K * N) * in_itemsize + N * 4 + B * N * 4,
    )


def _tiled_vmem_bytes(block_b, K, N, in_itemsize):
    lanes = max(_round_up(N, 128), 128)
    return (
        2 * block_b * K * in_itemsize      # double-buffered CLS tiles
        + K * lanes * in_itemsize          # resident W (lane-padded)
        + 8 * lanes * 4                    # resident bias
        + 2 * block_b * lanes * 4          # double-buffered output tiles (f32)
    )


def cls_pooler(
    cls_emb: jax.Array,
    w: jax.Array,
    b: jax.Array,
    *,
    block_b: int = 1024,
) -> jax.Array:
    """sigmoid(cls_emb @ w + b) computed in a Pallas TPU kernel.

    cls_emb may be f32 or bf16; it is streamed as-is (no wrapper cast).
    """
    B, K = cls_emb.shape
    K2, N = w.shape
    assert K == K2 == HIDDEN
    assert block_b % 8 == 0, "block_b must satisfy sublane tiling"

    if cls_emb.dtype not in (jnp.float32, jnp.bfloat16):
        cls_emb = cls_emb.astype(jnp.float32)
    in_dtype = cls_emb.dtype
    in_itemsize = jnp.dtype(in_dtype).itemsize

    # Only the tiny weight matrix is cast to match the CLS stream dtype.
    w_in = w.astype(in_dtype)
    b2d = b.reshape(1, N).astype(jnp.float32)

    # ---------------- single-shot path (tiny batch) ----------------
    if B <= min(block_b, _SINGLE_SHOT_MAX_B):
        return pl.pallas_call(
            _cls_pooler_kernel,
            out_shape=jax.ShapeDtypeStruct((B, N), jnp.float32),
            in_specs=[
                pl.BlockSpec(memory_space=pltpu.MemorySpace.VMEM),
                pl.BlockSpec(memory_space=pltpu.MemorySpace.VMEM),
                pl.BlockSpec(memory_space=pltpu.MemorySpace.VMEM),
            ],
            out_specs=pl.BlockSpec(memory_space=pltpu.MemorySpace.VMEM),
            cost_estimate=_cost_estimate(B, K, N, in_itemsize),
        )(cls_emb, w_in, b2d)

    # ---------------- tiled / pipelined path (large batch) ----------------
    # Guarantee >= 2 grid steps (so v7x's second TensorCore gets work), then
    # re-balance the tile size so the ragged last tile is not tiny.
    block_b_eff = min(block_b, _round_up(pl.cdiv(B, 2), 8))
    n_blocks = pl.cdiv(B, block_b_eff)
    block_b_eff = _round_up(pl.cdiv(B, n_blocks), 8)
    n_blocks = pl.cdiv(B, block_b_eff)

    needed = _tiled_vmem_bytes(block_b_eff, K, N, in_itemsize)
    vmem_limit = min(64 << 20, max(32 << 20, needed + (needed >> 1)))

    return pl.pallas_call(
        _cls_pooler_kernel,
        out_shape=jax.ShapeDtypeStruct((B, N), jnp.float32),
        grid_spec=pltpu.PrefetchScalarGridSpec(
            num_scalar_prefetch=0,
            grid=(n_blocks,),
            in_specs=[
                pl.BlockSpec((block_b_eff, K), lambda i: (i, 0)),  # CLS (pipelined)
                pl.BlockSpec((K, N), lambda i: (0, 0)),            # W: VMEM-resident
                pl.BlockSpec((1, N), lambda i: (0, 0)),            # bias: VMEM-resident
            ],
            out_specs=pl.BlockSpec((block_b_eff, N), lambda i: (i, 0)),
        ),
        compiler_params=pltpu.CompilerParams(
            # batch axis is embarrassingly parallel -> split across the two
            # TensorCores on v7x; neutral on single-TC v5e/v6e.
            dimension_semantics=("parallel",),
            vmem_limit_bytes=vmem_limit,
        ),
        cost_estimate=_cost_estimate(B, K, N, in_itemsize),
    )(cls_emb, w_in, b2d)


def init_params(key, num_labels: int):
    """Deterministic parameter init mirroring the PyTorch module.

    Wcls: xavier_normal_ on a [768, num_labels] matrix
    bcls: uniform(-0.8, 0.8) per element
    """
    kw, kb = jax.random.split(key)
    fan_in, fan_out = HIDDEN, num_labels
    std = (2.0 / (fan_in + fan_out)) ** 0.5
    w = std * jax.random.normal(kw, (HIDDEN, num_labels), dtype=jnp.float32)
    b = jax.random.uniform(
        kb, (num_labels,), dtype=jnp.float32, minval=-0.8, maxval=0.8
    )
    return w, b


if __name__ == "__main__":
    key = jax.random.PRNGKey(0)
    k_x, k_x2, k_p = jax.random.split(key, 3)

    num_labels = 8
    w, b = init_params(k_p, num_labels)

    # --- Path 1: small batch -> single-shot (no grid) kernel ---
    batch = 8
    cls_emb = jax.random.normal(k_x, (batch, HIDDEN), dtype=jnp.float32)
    out = jax.block_until_ready(cls_pooler(cls_emb, w, b))
    ref = jax.nn.sigmoid(cls_emb @ w + b[None, :])
    assert out.shape == (batch, num_labels)
    assert jnp.allclose(out, ref, atol=1e-5, rtol=1e-5)

    # --- Path 2: larger batch, NOT a multiple of the tile -> tiled pipeline
    # with a ragged (masked) last block; no input padding copy is made.
    batch2 = 272
    cls_emb2 = jax.random.normal(k_x2, (batch2, HIDDEN), dtype=jnp.float32)
    out2 = jax.block_until_ready(cls_pooler(cls_emb2, w, b, block_b=128))
    ref2 = jax.nn.sigmoid(cls_emb2 @ w + b[None, :])
    assert out2.shape == (batch2, num_labels)
    assert jnp.allclose(out2, ref2, atol=1e-5, rtol=1e-5)

    # --- Path 3: bf16 CLS stream (as an encoder would emit it); the kernel
    # streams bf16 directly, only W is cast in the wrapper, epilogue stays f32.
    cls_bf16 = cls_emb2.astype(jnp.bfloat16)
    out3 = jax.block_until_ready(cls_pooler(cls_bf16, w, b, block_b=128))
    assert out3.shape == (batch2, num_labels)
    assert jnp.allclose(out3, ref2, atol=2e-2, rtol=2e-2)

    print("KERNEL_OK")
</pallas_src>

<mosaic_0001>
module attributes {stable_mosaic.version = 11 : i64} {
  func.func @_cls_pooler_kernel(%arg0: memref<8x768xf32, #tpu.memory_space<vmem>>, %arg1: memref<768x8xf32, #tpu.memory_space<vmem>>, %arg2: memref<1x8xf32, #tpu.memory_space<vmem>>, %arg3: memref<8x8xf32, #tpu.memory_space<vmem>>) attributes {dimension_semantics = [], scalar_prefetch = 0 : i64, scratch_operands = 0 : i64, tpu.core_type = #tpu.core_type<tc>} {
    %c0 = arith.constant 0 : index
    %c0_0 = arith.constant 0 : index
    %0 = vector.load %arg0[%c0, %c0_0] : memref<8x768xf32, #tpu.memory_space<vmem>>, vector<8x768xf32>
    %c0_1 = arith.constant 0 : index
    %c0_2 = arith.constant 0 : index
    %1 = vector.load %arg1[%c0_1, %c0_2] : memref<768x8xf32, #tpu.memory_space<vmem>>, vector<768x8xf32>
    %cst = arith.constant dense<0.000000e+00> : vector<8x8xf32>
    %2 = tpu.matmul %0, %1, %cst {dimension_numbers = #tpu.dot_dimension_numbers<[1], [0], [0], [1], [0, 0, 1, 1], [], []>} : vector<8x768xf32>, vector<768x8xf32>, vector<8x8xf32> -> vector<8x8xf32>
    %c0_3 = arith.constant 0 : index
    %c0_4 = arith.constant 0 : index
    %3 = vector.load %arg2[%c0_3, %c0_4] : memref<1x8xf32, #tpu.memory_space<vmem>>, vector<1x8xf32>
    %4 = vector.broadcast %3 : vector<1x8xf32> to vector<8x8xf32>
    %5 = arith.addf %2, %4 : vector<8x8xf32>
    %6 = arith.negf %5 : vector<8x8xf32>
    %7 = math.exp %6 : vector<8x8xf32>
    %cst_5 = arith.constant 1.000000e+00 : f32
    %8 = vector.broadcast %cst_5 : f32 to vector<8x8xf32>
    %9 = arith.addf %8, %7 : vector<8x8xf32>
    %10 = arith.divf %8, %9 : vector<8x8xf32>
    %c0_6 = arith.constant 0 : index
    %c0_7 = arith.constant 0 : index
    %11 = vector.load %arg3[%c0_6, %c0_7] : memref<8x8xf32, #tpu.memory_space<vmem>>, vector<8x8xf32>
    tpu.vector_store %arg3[%c0_6, %c0_7], %10 {strides = array<i32>} : memref<8x8xf32, #tpu.memory_space<vmem>>, vector<8x8xf32>,
    return
  }
}

</mosaic_0001>

<bundles_post_ra>
// kernel: tpu_custom_call.1
= control target key start
LH: loop header
LB: loop body
LE: loop exit
PB: predicated region body
PF: predicated region fallthrough
CT: control target
= control target key end

     0   :  { %s930_s0 = inlined_call_operand.vmem [shape: f32[8,768], index: 0, kind: input, shape index: {}]   ;;  %s931_s1 = inlined_call_operand.vmem [shape: f32[768,8], index: 1, kind: input, shape index: {}]   ;;  %s932_s2 = inlined_call_operand.vmem [shape: f32[1,8], index: 2, kind: input, shape index: {}]   ;;  %s933_s3 = inlined_call_operand.hbm [shape: f32[8,8], index: 3, kind: output, shape index: {}]  }
   0x1   :  { %v37_v0 = vld [vmem:[%s931_s1 + $0x80] sm:$0xff]  ;;  %v38_v1 = vld [vmem:[%s931_s1 + $0x88] sm:$0xff]  ;;  %v39_v11 = vld [vmem:[%s931_s1 + $0x90] sm:$0xff] }
   0x2   :  { %v21_v2 = vld [vmem:[%s931_s1] sm:$0xff]  ;;  %v463_v3 = vpack.c.bf16 %v38_v1, %v37_v0  ;;  %v22_v4 = vld [vmem:[%s931_s1 + $0x8] sm:$0xff]  ;;  %v40_v13 = vld [vmem:[%s931_s1 + $0x98] sm:$0xff] }
   0x3   :  { %v69_v5 = vld [vmem:[%s931_s1 + $0x180] sm:$0xff]  ;;  %v70_v6 = vld [vmem:[%s931_s1 + $0x188] sm:$0xff]  ;;  %v465_v7 = vpack.c.bf16 %v22_v4, %v21_v2  ;;  %v23_v14 = vld [vmem:[%s931_s1 + $0x10] sm:$0xff]  ;;  %v467_v16 = vpack.c.bf16 %v40_v13, %v39_v11 }
   0x4   :  { %v495_v8 = vpack.c.bf16 %v70_v6, %v69_v5  ;;  %v53_v9 = vld [vmem:[%s931_s1 + $0x100] sm:$0xff]  ;;  %v54_v10 = vld [vmem:[%s931_s1 + $0x108] sm:$0xff]  ;;  %464 = vmatprep.subr.bf16.mxu0 %v463_v3  ;;  %v24_v15 = vld [vmem:[%s931_s1 + $0x18] sm:$0xff] }
   0x5   :  { %v497_v12 = vpack.c.bf16 %v54_v10, %v53_v9  ;;  %466 = vmatpush3.bf16.msra.mxu0 %v465_v7  ;;  %v469_v17 = vpack.c.bf16 %v24_v15, %v23_v14  ;;  %v71_v18 = vld [vmem:[%s931_s1 + $0x190] sm:$0xff]  ;;  %v72_v19 = vld [vmem:[%s931_s1 + $0x198] sm:$0xff]  ;;  %v41_v23 = vld [vmem:[%s931_s1 + $0xa0] sm:$0xff] }
   0x6   :  { %496 = vmatprep.subr.bf16.mxu1 %v495_v8  ;;  %v55_v20 = vld [vmem:[%s931_s1 + $0x110] sm:$0xff]  ;;  %v499_v21 = vpack.c.bf16 %v72_v19, %v71_v18  ;;  %v56_v22 = vld [vmem:[%s931_s1 + $0x118] sm:$0xff]  ;;  %v42_v24 = vld [vmem:[%s931_s1 + $0xa8] sm:$0xff]  ;;  %468 = vmatprep.subr.bf16.mxu0 %v467_v16 }
   0x7   :  { %498 = vmatpush3.bf16.msra.mxu1 %v497_v12  ;;  %v501_v25 = vpack.c.bf16 %v56_v22, %v55_v20  ;;  %v471_v26 = vpack.c.bf16 %v42_v24, %v41_v23  ;;  %v25_v27 = vld [vmem:[%s931_s1 + $0x20] sm:$0xff]  ;;  %v26_v28 = vld [vmem:[%s931_s1 + $0x28] sm:$0xff]  ;;  %v43_v35 = vld [vmem:[%s931_s1 + $0xb0] sm:$0xff] }
   0x8   :  { %v73_v29 = vld [vmem:[%s931_s1 + $0x1a0] sm:$0xff]  ;;  %500 = vmatprep.subr.bf16.mxu1 %v499_v21  ;;  %v74_v30 = vld [vmem:[%s931_s1 + $0x1a8] sm:$0xff]  ;;  %v473_v33 = vpack.c.bf16 %v26_v28, %v25_v27  ;;  %v44_v36 = vld [vmem:[%s931_s1 + $0xb8] sm:$0xff] }
   0x9   :  { %v57_v31 = vld [vmem:[%s931_s1 + $0x120] sm:$0xff]  ;;  %v58_v32 = vld [vmem:[%s931_s1 + $0x128] sm:$0xff]  ;;  %470 = vmatpush3.bf16.msra.mxu0 %v469_v17  ;;  %v503_v34 = vpack.c.bf16 %v74_v30, %v73_v29  ;;  %v27_v37 = vld [vmem:[%s931_s1 + $0x30] sm:$0xff]  ;;  %v475_v39 = vpack.c.bf16 %v44_v36, %v43_v35 }
   0xa   :  { %472 = vmatprep.subr.bf16.mxu0 %v471_v26  ;;  %v505_v38 = vpack.c.bf16 %v58_v32, %v57_v31  ;;  %v28_v40 = vld [vmem:[%s931_s1 + $0x38] sm:$0xff]  ;;  %v75_v41 = vld [vmem:[%s931_s1 + $0x1b0] sm:$0xff]  ;;  %v45_v46 = vld [vmem:[%s931_s1 + $0xc0] sm:$0xff] }
   0xb   :  { %502 = vmatpush3.bf16.msra.mxu1 %v501_v25  ;;  %v76_v42 = vld [vmem:[%s931_s1 + $0x1b8] sm:$0xff]  ;;  %v59_v44 = vld [vmem:[%s931_s1 + $0x130] sm:$0xff]  ;;  %v46_v47 = vld [vmem:[%s931_s1 + $0xc8] sm:$0xff]  ;;  %v477_v48 = vpack.c.bf16 %v28_v40, %v27_v37 }
   0xc   :  { %504 = vmatprep.subr.bf16.mxu1 %v503_v34  ;;  %v507_v43 = vpack.c.bf16 %v76_v42, %v75_v41  ;;  %v60_v45 = vld [vmem:[%s931_s1 + $0x138] sm:$0xff]  ;;  %v77_v49 = vld [vmem:[%s931_s1 + $0x1c0] sm:$0xff]  ;;  %v78_v50 = vld [vmem:[%s931_s1 + $0x1c8] sm:$0xff]  ;;  %v479_v52 = vpack.c.bf16 %v46_v47, %v45_v46 }
   0xd   :  { %474 = vmatpush3.bf16.msra.mxu0 %v473_v33  ;;  %v509_v51 = vpack.c.bf16 %v60_v45, %v59_v44  ;;  %v29_v53 = vld [vmem:[%s931_s1 + $0x40] sm:$0xff]  ;;  %v30_v54 = vld [vmem:[%s931_s1 + $0x48] sm:$0xff]  ;;  %v511_v56 = vpack.c.bf16 %v78_v50, %v77_v49  ;;  %v47_v58 = vld [vmem:[%s931_s1 + $0xd0] sm:$0xff] }
   0xe   :  { %476 = vmatprep.subr.bf16.mxu0 %v475_v39  ;;  %v61_v55 = vld [vmem:[%s931_s1 + $0x140] sm:$0xff]  ;;  %v62_v57 = vld [vmem:[%s931_s1 + $0x148] sm:$0xff]  ;;  %v48_v59 = vld [vmem:[%s931_s1 + $0xd8] sm:$0xff]  ;;  %v481_v62 = vpack.c.bf16 %v30_v54, %v29_v53 }
   0xf   :  { %506 = vmatpush3.bf16.msra.mxu1 %v505_v38  ;;  %v79_v60 = vld [vmem:[%s931_s1 + $0x1d0] sm:$0xff]  ;;  %v80_v61 = vld [vmem:[%s931_s1 + $0x1d8] sm:$0xff]  ;;  %v513_v63 = vpack.c.bf16 %v62_v57, %v61_v55  ;;  %v483_v0 = vpack.c.bf16 %v48_v59, %v47_v58  ;;  %v49_v6 = vld [vmem:[%s931_s1 + $0xe0] sm:$0xff] }
  0x10   :  { %508 = vmatprep.subr.bf16.mxu1 %v507_v43  ;;  %v31_v1 = vld [vmem:[%s931_s1 + $0x50] sm:$0xff]  ;;  %v32_v2 = vld [vmem:[%s931_s1 + $0x58] sm:$0xff]  ;;  %v515_v4 = vpack.c.bf16 %v80_v61, %v79_v60  ;;  %v50_v7 = vld [vmem:[%s931_s1 + $0xe8] sm:$0xff] }
  0x11   :  { %478 = vmatpush3.bf16.msra.mxu0 %v477_v48  ;;  %v63_v3 = vld [vmem:[%s931_s1 + $0x150] sm:$0xff]  ;;  %v64_v5 = vld [vmem:[%s931_s1 + $0x158] sm:$0xff]  ;;  %v81_v8 = vld [vmem:[%s931_s1 + $0x1e0] sm:$0xff]  ;;  %v485_v10 = vpack.c.bf16 %v32_v2, %v31_v1  ;;  %v487_v14 = vpack.c.bf16 %v50_v7, %v49_v6 }
  0x12   :  { %480 = vmatprep.subr.bf16.mxu0 %v479_v52  ;;  %v82_v9 = vld [vmem:[%s931_s1 + $0x1e8] sm:$0xff]  ;;  %v33_v11 = vld [vmem:[%s931_s1 + $0x60] sm:$0xff]  ;;  %v517_v13 = vpack.c.bf16 %v64_v5, %v63_v3  ;;  %v51_v19 = vld [vmem:[%s931_s1 + $0xf0] sm:$0xff] }
  0x13   :  { %510 = vmatpush3.bf16.msra.mxu1 %v509_v51  ;;  %v16_v12 = vld [vmem:[%s930_s0 + $0x8] sm:$0xff]  ;;  %v65_v16 = vld [vmem:[%s931_s1 + $0x160] sm:$0xff]  ;;  %v519_v18 = vpack.c.bf16 %v82_v9, %v81_v8  ;;  %v52_v20 = vld [vmem:[%s931_s1 + $0xf8] sm:$0xff] }
  0x14   :  { %512 = vmatprep.subr.bf16.mxu1 %v511_v56  ;;  %v34_v15 = vld [vmem:[%s931_s1 + $0x68] sm:$0xff]  ;;  %188 = vmatprep.mubr.f32.mxu0 %v16_v12  ;;  %v18_v21 = vld [vmem:[%s930_s0 + $0x18] sm:$0xff]  ;;  %v83_v22 = vld [vmem:[%s931_s1 + $0x1f0] sm:$0xff]  ;;  %v491_v26 = vpack.c.bf16 %v52_v20, %v51_v19 }
  0x15   :  { %482 = vmatpush3.bf16.msra.mxu0 %v481_v62  ;;  %v66_v17 = vld [vmem:[%s931_s1 + $0x168] sm:$0xff]  ;;  %v84_v23 = vld [vmem:[%s931_s1 + $0x1f8] sm:$0xff]  ;;  %258 = vmatprep.mubr.f32.mxu1 %v18_v21  ;;  %v489_v24 = vpack.c.bf16 %v34_v15, %v33_v11  ;;  %v35_v27 = vld [vmem:[%s931_s1 + $0x70] sm:$0xff] }
  0x16   :  { %484 = vmatprep.subr.bf16.mxu0 %v483_v0  ;;  %v521_v25 = vpack.c.bf16 %v66_v17, %v65_v16  ;;  %v36_v28 = vld [vmem:[%s931_s1 + $0x78] sm:$0xff]  ;;  %v67_v29 = vld [vmem:[%s931_s1 + $0x170] sm:$0xff]  ;;  %v523_v30 = vpack.c.bf16 %v84_v23, %v83_v22  ;;  %v101_v32 = vld [vmem:[%s931_s1 + $0x280] sm:$0xff] }
  0x17   :  { %514 = vmatpush3.bf16.msra.mxu1 %v513_v63  ;;  %v68_v31 = vld [vmem:[%s931_s1 + $0x178] sm:$0xff]  ;;  %v102_v33 = vld [vmem:[%s931_s1 + $0x288] sm:$0xff]  ;;  %v493_v34 = vpack.c.bf16 %v36_v28, %v35_v27  ;;  %v85_v37 = vld [vmem:[%s931_s1 + $0x200] sm:$0xff] }
  0x18   :  { %516 = vmatprep.subr.bf16.mxu1 %v515_v4  ;;  %v525_v35 = vpack.c.bf16 %v68_v31, %v67_v29  ;;  %v527_v36 = vpack.c.bf16 %v102_v33, %v101_v32  ;;  %v86_v38 = vld [vmem:[%s931_s1 + $0x208] sm:$0xff]  ;;  %v103_v39 = vld [vmem:[%s931_s1 + $0x290] sm:$0xff]  ;;  %v104_v40 = vld [vmem:[%s931_s1 + $0x298] sm:$0xff] }
  0x19   :  { %486 = vmatpush3.bf16.msra.mxu0 %v485_v10  ;;  %v15_v41 = vld [vmem:[%s930_s0] sm:$0xff]  ;;  %v529_v42 = vpack.c.bf16 %v86_v38, %v85_v37  ;;  %v17_v43 = vld [vmem:[%s930_s0 + $0x10] sm:$0xff]  ;;  %v531_v44 = vpack.c.bf16 %v104_v40, %v103_v39  ;;  %v88_v46 = vld [vmem:[%s931_s1 + $0x218] sm:$0xff] }
  0x1a   :  { %488 = vmatprep.subr.bf16.mxu0 %v487_v14  ;;  %v87_v45 = vld [vmem:[%s931_s1 + $0x210] sm:$0xff]  ;;  %v105_v47 = vld [vmem:[%s931_s1 + $0x2a0] sm:$0xff]  ;;  %v106_v48 = vld [vmem:[%s931_s1 + $0x2a8] sm:$0xff] }
  0x1b   :  { %518 = vmatpush3.bf16.msra.mxu1 %v517_v13  ;;  %v20_v49 = vld [vmem:[%s930_s0 + $0x28] sm:$0xff] }
  0x1c   :  { %520 = vmatprep.subr.bf16.mxu1 %v519_v18 }
  0x1d   :  { %490 = vmatpush3.bf16.msra.mxu0 %v489_v24 }
  0x1e   :  { %492 = vmatprep.subr.bf16.mxu0 %v491_v26 }
  0x1f   :  { %522 = vmatpush3.bf16.msra.mxu1 %v521_v25 }
  0x20   :  { %524 = vmatprep.subr.bf16.mxu1 %v523_v30 }
  0x21   :  { %494 = vmatpush3.bf16.msra.mxu0 %v493_v34 }
  0x22   :  { %528 = vmatprep.subr.bf16.mxu0 %v527_v36 }
  0x23   :  { %526 = vmatpush3.bf16.msra.mxu1 %v525_v35 }
  0x24   :  { %8 = vsyncpa [#allocation3], 0  ;;  %189 = vmatmul.mubr.f32.vlgmr.msra.gmra.mrb[0].mxu0 %v15_v41  ;;  %v533_v50 = vpack.c.bf16 %v88_v46, %v87_v45  ;;  %v535_v51 = vpack.c.bf16 %v106_v48, %v105_v47  ;;  %v89_v52 = vld [vmem:[%s931_s1 + $0x220] sm:$0xff]  ;;  %v90_v53 = vld [vmem:[%s931_s1 + $0x228] sm:$0xff]  ;;  %vm340_vm0 = vcmask 64512  }
  0x25   :  { %530 = vmatpush3.bf16.msra.mxu0 %v529_v42  ;;  %328 = vmatprep.mubr.f32.mxu0 %v20_v49  ;;  %v107_v54 = vld [vmem:[%s931_s1 + $0x2b0] sm:$0xff]  ;;  %v108_v55 = vld [vmem:[%s931_s1 + $0x2b8] sm:$0xff]  ;;  %v537_v56 = vpack.c.bf16 %v90_v53, %v89_v52  ;;  %v109_v60 = vld [vmem:[%s931_s1 + $0x2c0] sm:$0xff] }
  0x26   :  { %259 = vmatmul.mubr.f32.vlgmr.msra.gmra.mrb[0].mxu1 %v17_v43  ;;  %532 = vmatprep.subr.bf16.mxu0 %v531_v44  ;;  %v539_v57 = vpack.c.bf16 %v108_v55, %v107_v54  ;;  %v91_v58 = vld [vmem:[%s931_s1 + $0x230] sm:$0xff]  ;;  %v92_v59 = vld [vmem:[%s931_s1 + $0x238] sm:$0xff]  ;;  %v110_v61 = vld [vmem:[%s931_s1 + $0x2c8] sm:$0xff] }
  0x27   :  { %v541_v62 = vpack.c.bf16 %v92_v59, %v91_v58  ;;  %v543_v63 = vpack.c.bf16 %v110_v61, %v109_v60  ;;  %v93_v0 = vld [vmem:[%s931_s1 + $0x240] sm:$0xff]  ;;  %v94_v1 = vld [vmem:[%s931_s1 + $0x248] sm:$0xff]  ;;  %v111_v2 = vld [vmem:[%s931_s1 + $0x2d0] sm:$0xff] }
  0x28   :  { %v112_v3 = vld [vmem:[%s931_s1 + $0x2d8] sm:$0xff]  ;;  %v545_v4 = vpack.c.bf16 %v94_v1, %v93_v0  ;;  %v95_v6 = vld [vmem:[%s931_s1 + $0x250] sm:$0xff]  ;;  %v113_v8 = vld [vmem:[%s931_s1 + $0x2e0] sm:$0xff] }
  0x29   :  { %534 = vmatpush3.bf16.msra.mxu0 %v533_v50  ;;  %v547_v5 = vpack.c.bf16 %v112_v3, %v111_v2  ;;  %v96_v7 = vld [vmem:[%s931_s1 + $0x258] sm:$0xff]  ;;  %v114_v9 = vld [vmem:[%s931_s1 + $0x2e8] sm:$0xff]  ;;  %v97_v12 = vld [vmem:[%s931_s1 + $0x260] sm:$0xff] }
  0x2a   :  { %536 = vmatprep.subr.bf16.mxu0 %v535_v51  ;;  %v549_v10 = vpack.c.bf16 %v96_v7, %v95_v6  ;;  %v551_v11 = vpack.c.bf16 %v114_v9, %v113_v8  ;;  %v98_v13 = vld [vmem:[%s931_s1 + $0x268] sm:$0xff]  ;;  %v115_v14 = vld [vmem:[%s931_s1 + $0x2f0] sm:$0xff]  ;;  %v116_v15 = vld [vmem:[%s931_s1 + $0x2f8] sm:$0xff] }
  0x2b   :  { %v553_v16 = vpack.c.bf16 %v98_v13, %v97_v12  ;;  %v555_v17 = vpack.c.bf16 %v116_v15, %v115_v14  ;;  %v99_v18 = vld [vmem:[%s931_s1 + $0x270] sm:$0xff]  ;;  %v100_v19 = vld [vmem:[%s931_s1 + $0x278] sm:$0xff]  ;;  %v19_v21 = vld [vmem:[%s930_s0 + $0x20] sm:$0xff]  ;;  %s588_s0 = smov [#allocation2]  }
  0x2c   :  { %v557_v20 = vpack.c.bf16 %v100_v19, %v99_v18  ;;  %v356_v23 = vld [vmem:[%s932_s2] ss:$0 sm:$0xff]  ;;  %s348_s1 = sshll.u32 %s588_s0, 4  ;;  %s349_s1 = int_to_ptr.vmem [resolvable:$true] %s348_s1 }
  0x2d   :  { %538 = vmatpush3.bf16.msra.mxu0 %v537_v56  ;;  %s564_s2 = scalar_lea.vmem %s349_s1, 128  ;;  %p569_p1 = scmp.lt.s32.totalorder %s349_s1, %s349_s1 }
  0x2e   :  { %540 = vmatprep.subr.bf16.mxu0 %v539_v57  ;;  %p565_p0 = scmp.ne.s32.totalorder %s349_s1, %s564_s2  ;;  %p570_p2 = scmp.lt.s32.totalorder %s564_s2, %s564_s2 }
  0x30   :  { %p571_p3 = por %p570_p2, %p569_p1 }
  0x31   :  { %542 = vmatpush3.bf16.msra.mxu0 %v541_v62 }
  0x32   :  { %544 = vmatprep.subr.bf16.mxu0 %v543_v63  ;;  %p572_p4 = pnand %p571_p3, %p565_p0 }
  0x35   :  { %546 = vmatpush3.bf16.msra.mxu0 %v545_v4 }
  0x36   :  { %548 = vmatprep.subr.bf16.mxu0 %v547_v5 }
  0x39   :  { %550 = vmatpush3.bf16.msra.mxu0 %v549_v10 }
  0x3a   :  { %552 = vmatprep.subr.bf16.mxu0 %v551_v11 }
  0x3d   :  { %554 = vmatpush3.bf16.msra.mxu0 %v553_v16 }
  0x3e   :  { %556 = vmatprep.subr.bf16.mxu0 %v555_v17 }
  0x41   :  { %558 = vmatpush3.bf16.msra.mxu0 %v557_v20 }
  0x44   :  { %329 = vmatmul.mubr.f32.vlgmr.msra.gmra.mrb[2].mxu0 %v19_v21 }
  0xf7   :  { %v390_v22 = vpop.f32.mrb[0].mxu0 }
  0xf8   :  { %v391_v24 = vpop.f32.mrb[1].mxu0 }
  0xf9   :  { %v425_v25 = vpop.f32.mrb[0].mxu1  ;;  %v392_v26 = vadd.f32 %v391_v24, %v390_v22 }
  0xfa   :  { %v426_v27 = vpop.f32.mrb[1].mxu1 }
  0xfb   :  { %v427_v28 = vadd.f32 %v426_v27, %v425_v25  ;;  %v191_v29 = vadd.f32 %v392_v26, %v356_v23 }
  0xfd   :  { %v261_v30 = vadd.f32 %v427_v28, %v191_v29 }
 0x117   :  { %v460_v31 = vpop.f32.mrb[2].mxu0 }
 0x118   :  { %v461_v32 = vpop.f32.mrb[3].mxu0 }
 0x119   :  { %v462_v33 = vadd.f32 %v461_v32, %v460_v31 }
 0x11b   :  { %v331_v34 = vadd.f32 %v462_v33, %v261_v30 }
 0x11d   :  { %v357_v35 = vmul.f32 -1.442695, %v331_v34 }
 0x11f   :  { %560 = vpow2.f32 %v357_v35 }
 0x129   :  { %v561_v36 = vpop.eup %560 }
 0x12a   :  { %v337_v37 = vadd.f32 1.0, %v561_v36 }
 0x12c   :  { %562 = vrcp.f32 %v337_v37 }
 0x136   :  { %v563_v38 = vpop.eup %562 }
 0x137   :  { %341 = vst.msk [vmem:[#allocation2] sm:$0xff] %vm340_vm0, %v563_v38 }
 0x138   :  { %575 = shalt.err (!%p572_p4)
}
 0x139   :  { %s576_s4 = scalar_lea.hbm %s933_s3, 128 }
 0x13a   :  { %p577_p5 = scmp.ne.s32.totalorder %s933_s3, %s576_s4  ;;  %p580_p6 = scmp.lt.u32.totalorder %s576_s4, %s933_s3 }
 0x13c   :  { %p582_p7 = pnand %p580_p6, %p577_p5 }
 0x13e   :  { %585 = shalt.err (!%p582_p7)
}
 0x13f   :  { %351 = dma.vmem_to_hbm [thread:$0]  %s349_s1, 128, %s933_s3, [#allocation3]  }
 0x140   :  { %586 = dma.done.wait [#allocation3], 128  }
 0x141   :  { %587 = vsyncadd [#allocation3], 4294967168 }
 0x142   :  { %355 = vsyncpa [#allocation3], 1 }

</bundles_post_ra>
